<compile_context>
chip_gen: v5e
topology: v5e:2x2
jax: 0.10.0
libtpu: 0.0.40
codegen_flags: <defaults>
</compile_context>

<pallas_src>
import jax
import jax.numpy as jnp
import numpy as np
from jax import lax
from jax.experimental import pallas as pl
from jax.experimental.pallas import tpu as pltpu

# Small-but-aligned sizes: H multiple of 128 (lane-aligned gate slices),
# B = 8 (one sublane group), matching the module's defaults for H/E/O.
B = 8          # batch
H = 128        # hidden_size
E = 64         # embedding_size
O = 1          # output_size
VOCAB = 196    # embedding table rows


def gru_gat_fused_kernel(x_ref, temb_ref, h0_ref,
                         wih_ref, whh_ref, b_rz_ref, b_in_ref, b_hn_ref,
                         woe_ref, woh_ref, bo_ref,
                         out_ref, hfinal_ref):
    """Single invocation; the full T-step recurrence runs in-kernel.

    x_ref    : (T, B, 1)  speed inputs
    temb_ref : (T, B, E)  embedded times
    h0_ref   : (B, H)     initial hidden state
    wih_ref  : (1, 3H)    W_ih^T as a broadcast row (gate order [r, z, n])
    whh_ref  : (H, 3H)    W_hh^T (f32, resident MXU operand)
    b_rz_ref : (1, 2H)    (b_ih + b_hh) for the r/z gates, pre-folded in glue
    b_in_ref : (1, H)     b_ih for the n gate
    b_hn_ref : (1, H)     b_hh for the n gate (must stay inside r*(...))
    woe_ref  : (1, E)     out-linear weights acting on time_emb   (O == 1)
    woh_ref  : (1, H)     out-linear weights acting on GRU output (O == 1)
    bo_ref   : (1, O)     out-linear bias
    out_ref  : (T, B, O)  per-step outputs (written back to HBM once)
    hfinal_ref: (B, H)    final hidden state
    """
    T = x_ref.shape[0]

    # Small row operands hoisted once (a few vregs each). W_hh stays behind
    # its ref so the MXU operand streams from VMEM inside the loop.
    wih = wih_ref[...]        # (1, 3H)
    b_rz = b_rz_ref[...]      # (1, 2H)
    b_in = b_in_ref[...]      # (1, H)
    b_hn = b_hn_ref[...]      # (1, H)
    woh = woh_ref[...]        # (1, H)

    def step(t, h):
        x_t = x_ref[t]                                   # (B, 1)
        # K=1 "matmul" as a VPU broadcast multiply: (B,1)*(1,3H) -> (B,3H).
        gx = x_t * wih
        # Hidden matmul on the MXU, f32 accumulate.
        gh = jnp.dot(h, whh_ref[...], preferred_element_type=jnp.float32)
        # Gates, PyTorch order [r, z, n]; r/z biases pre-folded in glue.
        rz = jax.nn.sigmoid(gx[:, :2 * H] + gh[:, :2 * H] + b_rz)
        r = rz[:, :H]
        z = rz[:, H:]
        n = jnp.tanh(gx[:, 2 * H:] + b_in + r * (gh[:, 2 * H:] + b_hn))
        h_new = (1.0 - z) * n + z * h
        # Recurrence-dependent part of the output Linear only (N=1 matmul ->
        # VPU multiply + XLU lane reduce); store into the resident out block.
        out_ref[t] = jnp.sum(h_new * woh, axis=-1, keepdims=True)   # (B, 1)
        return h_new

    unroll = True if T <= 32 else 8
    h_final = lax.fori_loop(0, T, step, h0_ref[...], unroll=unroll)
    hfinal_ref[...] = h_final

    # Recurrence-independent output terms, applied once over all timesteps:
    # time-embedding projection (VPU mul + lane reduce) and output bias.
    temb_contrib = jnp.sum(temb_ref[...] * woe_ref[...], axis=-1, keepdims=True)
    out_ref[...] = out_ref[...] + temb_contrib + bo_ref[...]


def make_params(key):
    ks = jax.random.split(key, 7)
    scale = 1.0 / np.sqrt(H)
    return {
        "emb":   jax.random.normal(ks[0], (VOCAB, E), jnp.float32),
        "w_ih":  jax.random.uniform(ks[1], (3 * H, 1), jnp.float32, -scale, scale),
        "w_hh":  jax.random.uniform(ks[2], (3 * H, H), jnp.float32, -scale, scale),
        "b_ih":  jax.random.uniform(ks[3], (3 * H,),   jnp.float32, -scale, scale),
        "b_hh":  jax.random.uniform(ks[4], (3 * H,),   jnp.float32, -scale, scale),
        "w_out": jax.random.uniform(ks[5], (O, E + H), jnp.float32, -scale, scale),
        "b_out": jax.random.uniform(ks[6], (O,),       jnp.float32, -scale, scale),
    }


def _prep_weights(params):
    """Glue-side weight preprocessing (transposes, bias folding)."""
    assert params["w_out"].shape[0] == 1, "O=1 row layout assumed by the kernel"
    wih_row = params["w_ih"].T                                   # (1, 3H)
    whh_t = params["w_hh"].T                                     # (H, 3H) f32
    b_rz = (params["b_ih"][:2 * H] + params["b_hh"][:2 * H])[None, :]   # (1, 2H)
    b_in = params["b_ih"][2 * H:][None, :]                       # (1, H)
    b_hn = params["b_hh"][2 * H:][None, :]                       # (1, H)
    woe_row = params["w_out"][:, :E]                             # (1, E)
    woh_row = params["w_out"][:, E:]                             # (1, H)
    bo = params["b_out"][None, :]                                # (1, O)
    return wih_row, whh_t, b_rz, b_in, b_hn, woe_row, woh_row, bo


def encoder_gru_gat_sequence(params, speeds, times, hidden):
    """Run T GRU_GAT timesteps in ONE pallas_call (single grid step).

    speeds: (T, B) f32, times: (T, B) i32, hidden: (1, B, H) f32.
    Returns (outs (T, B, O), h_final (1, B, H)).
    """
    T = speeds.shape[0]
    # Embedding gather stays in glue (data-dependent indexing).
    time_emb = jnp.take(params["emb"], times.reshape(-1), axis=0).reshape(T, B, E)
    x = speeds.reshape(T, B, 1).astype(jnp.float32)
    h0 = hidden.reshape(B, H).astype(jnp.float32)

    wih_row, whh_t, b_rz, b_in, b_hn, woe_row, woh_row, bo = _prep_weights(params)

    full2 = lambda i: (0, 0)          # whole-array resident blocks
    full3 = lambda i: (0, 0, 0)

    grid_spec = pltpu.PrefetchScalarGridSpec(
        num_scalar_prefetch=0,
        grid=(1,),
        in_specs=[
            pl.BlockSpec((T, B, 1), full3),        # x (all steps, resident)
            pl.BlockSpec((T, B, E), full3),        # time_emb (all steps, resident)
            pl.BlockSpec((B, H), full2),           # h0
            pl.BlockSpec((1, 3 * H), full2),       # W_ih^T row
            pl.BlockSpec((H, 3 * H), full2),       # W_hh^T (f32)
            pl.BlockSpec((1, 2 * H), full2),       # b_rz (folded)
            pl.BlockSpec((1, H), full2),           # b_ih_n
            pl.BlockSpec((1, H), full2),           # b_hh_n
            pl.BlockSpec((1, E), full2),           # out weights (time_emb part)
            pl.BlockSpec((1, H), full2),           # out weights (gru part)
            pl.BlockSpec((1, O), full2),           # out bias
        ],
        out_specs=(
            pl.BlockSpec((T, B, O), full3),        # all outputs (one writeback)
            pl.BlockSpec((B, H), full2),           # final hidden
        ),
    )

    outs, h_final = pl.pallas_call(
        gru_gat_fused_kernel,
        out_shape=(jax.ShapeDtypeStruct((T, B, O), jnp.float32),
                   jax.ShapeDtypeStruct((B, H), jnp.float32)),
        grid_spec=grid_spec,
        compiler_params=pltpu.CompilerParams(
            dimension_semantics=("arbitrary",)),
    )(x, time_emb, h0, wih_row, whh_t, b_rz, b_in, b_hn, woe_row, woh_row, bo)

    return outs, h_final.reshape(1, B, H)


def encoder_gru_gat_forward(params, input_speed, time, hidden):
    """Single-step forward, matching the PyTorch module's forward() exactly.

    input_speed: (B,) f32, time: (B,) i32, hidden: (1, B, H) f32.
    Returns (out (B, O), h_new (1, B, H)).
    """
    outs, h_new = encoder_gru_gat_sequence(
        params, input_speed.reshape(1, B), time.reshape(1, B), hidden)
    return outs[0], h_new


# ----------------------------- pure-JAX reference ---------------------------

def _gru_step_ref(params, x_b, temb_b, h_b):
    gx = x_b @ params["w_ih"].T + params["b_ih"]
    gh = h_b @ params["w_hh"].T + params["b_hh"]
    r = jax.nn.sigmoid(gx[:, :H] + gh[:, :H])
    z = jax.nn.sigmoid(gx[:, H:2 * H] + gh[:, H:2 * H])
    n = jnp.tanh(gx[:, 2 * H:] + r * gh[:, 2 * H:])
    h_new = (1.0 - z) * n + z * h_b
    cat = jnp.concatenate([temb_b, h_new], axis=1)
    out = cat @ params["w_out"].T + params["b_out"]
    return out, h_new


def reference_sequence(params, speeds, times, hidden):
    T = speeds.shape[0]
    temb = jnp.take(params["emb"], times.reshape(-1), axis=0).reshape(T, B, E)
    x = speeds.reshape(T, B, 1).astype(jnp.float32)

    def step(h, inp):
        x_b, te_b = inp
        out, h_new = _gru_step_ref(params, x_b, te_b, h)
        return h_new, out

    h_final, outs = jax.lax.scan(step, hidden.reshape(B, H), (x, temb))
    return outs, h_final.reshape(1, B, H)


if __name__ == "__main__":
    key = jax.random.PRNGKey(0)
    k_p, k_speed, k_time = jax.random.split(key, 3)
    params = make_params(k_p)

    # f32 weights now, but keep a safe tolerance for MXU pass precision.
    RTOL, ATOL = 2e-2, 2e-2

    # --- single-step call (exact PyTorch module forward semantics) ---
    input_speed = jax.random.normal(k_speed, (B,), jnp.float32)
    time = jax.random.randint(k_time, (B,), 0, VOCAB, jnp.int32)
    hidden0 = jnp.zeros((1, B, H), jnp.float32)           # initHidden()

    out1, h1 = encoder_gru_gat_forward(params, input_speed, time, hidden0)
    out1 = jax.block_until_ready(out1)
    h1 = jax.block_until_ready(h1)
    assert out1.shape == (B, O) and h1.shape == (1, B, H)

    outs_ref1, h_ref1 = reference_sequence(
        params, input_speed.reshape(1, B), time.reshape(1, B), hidden0)
    np.testing.assert_allclose(np.asarray(out1), np.asarray(outs_ref1[0]),
                               rtol=RTOL, atol=ATOL)
    np.testing.assert_allclose(np.asarray(h1), np.asarray(h_ref1),
                               rtol=RTOL, atol=ATOL)

    # --- multi-step sequence: whole time loop fused inside one pallas_call ---
    T = 12
    k_sp2, k_tm2 = jax.random.split(jax.random.PRNGKey(1), 2)
    speeds = jax.random.normal(k_sp2, (T, B), jnp.float32)
    times = jax.random.randint(k_tm2, (T, B), 0, VOCAB, jnp.int32)

    outs, h_T = encoder_gru_gat_sequence(params, speeds, times, hidden0)
    outs = jax.block_until_ready(outs)
    h_T = jax.block_until_ready(h_T)
    assert outs.shape == (T, B, O) and h_T.shape == (1, B, H)

    outs_ref, h_T_ref = reference_sequence(params, speeds, times, hidden0)
    np.testing.assert_allclose(np.asarray(outs), np.asarray(outs_ref),
                               rtol=RTOL, atol=ATOL)
    np.testing.assert_allclose(np.asarray(h_T), np.asarray(h_T_ref),
                               rtol=RTOL, atol=ATOL)

    print("KERNEL_OK")
</pallas_src>

<mosaic_0001>
module attributes {stable_mosaic.version = 11 : i64} {
  func.func @gru_gat_fused_kernel(%arg0: i32, %arg1: memref<1x8x1xf32, #tpu.memory_space<vmem>>, %arg2: memref<1x8x64xf32, #tpu.memory_space<vmem>>, %arg3: memref<8x128xf32, #tpu.memory_space<vmem>>, %arg4: memref<1x384xf32, #tpu.memory_space<vmem>>, %arg5: memref<128x384xf32, #tpu.memory_space<vmem>>, %arg6: memref<1x256xf32, #tpu.memory_space<vmem>>, %arg7: memref<1x128xf32, #tpu.memory_space<vmem>>, %arg8: memref<1x128xf32, #tpu.memory_space<vmem>>, %arg9: memref<1x64xf32, #tpu.memory_space<vmem>>, %arg10: memref<1x128xf32, #tpu.memory_space<vmem>>, %arg11: memref<1x1xf32, #tpu.memory_space<vmem>>, %arg12: memref<1x8x1xf32, #tpu.memory_space<vmem>>, %arg13: memref<8x128xf32, #tpu.memory_space<vmem>>) attributes {dimension_semantics = [#tpu.dimension_semantics<arbitrary>], iteration_bounds = array<i64: 1>, scalar_prefetch = 0 : i64, scratch_operands = 0 : i64, tpu.core_type = #tpu.core_type<tc>, window_params = [{pipeline_mode = #tpu.pipeline_mode<synchronous>, transform_indices = @transform_0, window_bounds = array<i64: 1, 8, 1>}, {pipeline_mode = #tpu.pipeline_mode<synchronous>, transform_indices = @transform_1, window_bounds = array<i64: 1, 8, 64>}, {pipeline_mode = #tpu.pipeline_mode<synchronous>, transform_indices = @transform_2, window_bounds = array<i64: 8, 128>}, {pipeline_mode = #tpu.pipeline_mode<synchronous>, transform_indices = @transform_3, window_bounds = array<i64: 1, 384>}, {pipeline_mode = #tpu.pipeline_mode<synchronous>, transform_indices = @transform_4, window_bounds = array<i64: 128, 384>}, {pipeline_mode = #tpu.pipeline_mode<synchronous>, transform_indices = @transform_5, window_bounds = array<i64: 1, 256>}, {pipeline_mode = #tpu.pipeline_mode<synchronous>, transform_indices = @transform_6, window_bounds = array<i64: 1, 128>}, {pipeline_mode = #tpu.pipeline_mode<synchronous>, transform_indices = @transform_7, window_bounds = array<i64: 1, 128>}, {pipeline_mode = #tpu.pipeline_mode<synchronous>, transform_indices = @transform_8, window_bounds = array<i64: 1, 64>}, {pipeline_mode = #tpu.pipeline_mode<synchronous>, transform_indices = @transform_9, window_bounds = array<i64: 1, 128>}, {pipeline_mode = #tpu.pipeline_mode<synchronous>, transform_indices = @transform_10, window_bounds = array<i64: 1, 1>}, {pipeline_mode = #tpu.pipeline_mode<synchronous>, transform_indices = @transform_11, window_bounds = array<i64: 1, 8, 1>}, {pipeline_mode = #tpu.pipeline_mode<synchronous>, transform_indices = @transform_12, window_bounds = array<i64: 8, 128>}]} {
    %c0 = arith.constant 0 : index
    %c0_0 = arith.constant 0 : index
    %0 = vector.load %arg4[%c0, %c0_0] : memref<1x384xf32, #tpu.memory_space<vmem>>, vector<1x384xf32>
    %c0_1 = arith.constant 0 : index
    %c0_2 = arith.constant 0 : index
    %1 = vector.load %arg6[%c0_1, %c0_2] : memref<1x256xf32, #tpu.memory_space<vmem>>, vector<1x256xf32>
    %c0_3 = arith.constant 0 : index
    %c0_4 = arith.constant 0 : index
    %2 = vector.load %arg7[%c0_3, %c0_4] : memref<1x128xf32, #tpu.memory_space<vmem>>, vector<1x128xf32>
    %c0_5 = arith.constant 0 : index
    %c0_6 = arith.constant 0 : index
    %3 = vector.load %arg8[%c0_5, %c0_6] : memref<1x128xf32, #tpu.memory_space<vmem>>, vector<1x128xf32>
    %c0_7 = arith.constant 0 : index
    %c0_8 = arith.constant 0 : index
    %4 = vector.load %arg10[%c0_7, %c0_8] : memref<1x128xf32, #tpu.memory_space<vmem>>, vector<1x128xf32>
    %c0_9 = arith.constant 0 : index
    %c0_10 = arith.constant 0 : index
    %5 = vector.load %arg3[%c0_9, %c0_10] : memref<8x128xf32, #tpu.memory_space<vmem>>, vector<8x128xf32>
    %c0_i32 = arith.constant 0 : i32
    %6 = arith.index_cast %c0_i32 : i32 to index
    %c0_11 = arith.constant 0 : index
    %c0_12 = arith.constant 0 : index
    %7 = vector.load %arg1[%6, %c0_11, %c0_12] : memref<1x8x1xf32, #tpu.memory_space<vmem>>, vector<1x8x1xf32>
    %8 = vector.shape_cast %7 : vector<1x8x1xf32> to vector<8x1xf32>
    %9 = vector.broadcast %8 : vector<8x1xf32> to vector<8x384xf32>
    %10 = vector.broadcast %0 : vector<1x384xf32> to vector<8x384xf32>
    %11 = arith.mulf %9, %10 : vector<8x384xf32>
    %c0_13 = arith.constant 0 : index
    %c0_14 = arith.constant 0 : index
    %12 = vector.load %arg5[%c0_13, %c0_14] : memref<128x384xf32, #tpu.memory_space<vmem>>, vector<128x384xf32>
    %cst = arith.constant dense<0.000000e+00> : vector<8x384xf32>
    %13 = tpu.matmul %5, %12, %cst {dimension_numbers = #tpu.dot_dimension_numbers<[1], [0], [0], [1], [0, 0, 1, 1], [], []>} : vector<8x128xf32>, vector<128x384xf32>, vector<8x384xf32> -> vector<8x384xf32>
    %14 = vector.extract_strided_slice %11 {offsets = [0, 0], sizes = [8, 256], strides = [1, 1]} : vector<8x384xf32> to vector<8x256xf32>
    %15 = vector.extract_strided_slice %13 {offsets = [0, 0], sizes = [8, 256], strides = [1, 1]} : vector<8x384xf32> to vector<8x256xf32>
    %16 = arith.addf %14, %15 : vector<8x256xf32>
    %17 = vector.broadcast %1 : vector<1x256xf32> to vector<8x256xf32>
    %18 = arith.addf %16, %17 : vector<8x256xf32>
    %19 = arith.negf %18 : vector<8x256xf32>
    %20 = math.exp %19 : vector<8x256xf32>
    %cst_15 = arith.constant 1.000000e+00 : f32
    %21 = vector.broadcast %cst_15 : f32 to vector<8x256xf32>
    %22 = arith.addf %21, %20 : vector<8x256xf32>
    %23 = arith.divf %21, %22 : vector<8x256xf32>
    %24 = vector.extract_strided_slice %23 {offsets = [0, 0], sizes = [8, 128], strides = [1, 1]} : vector<8x256xf32> to vector<8x128xf32>
    %25 = vector.extract_strided_slice %23 {offsets = [0, 128], sizes = [8, 128], strides = [1, 1]} : vector<8x256xf32> to vector<8x128xf32>
    %26 = vector.extract_strided_slice %11 {offsets = [0, 256], sizes = [8, 128], strides = [1, 1]} : vector<8x384xf32> to vector<8x128xf32>
    %27 = vector.broadcast %2 : vector<1x128xf32> to vector<8x128xf32>
    %28 = arith.addf %26, %27 : vector<8x128xf32>
    %29 = vector.extract_strided_slice %13 {offsets = [0, 256], sizes = [8, 128], strides = [1, 1]} : vector<8x384xf32> to vector<8x128xf32>
    %30 = vector.broadcast %3 : vector<1x128xf32> to vector<8x128xf32>
    %31 = arith.addf %29, %30 : vector<8x128xf32>
    %32 = arith.mulf %24, %31 : vector<8x128xf32>
    %33 = arith.addf %28, %32 : vector<8x128xf32>
    %34 = math.tanh %33 : vector<8x128xf32>
    %cst_16 = arith.constant 1.000000e+00 : f32
    %35 = vector.broadcast %cst_16 : f32 to vector<8x128xf32>
    %36 = arith.subf %35, %25 : vector<8x128xf32>
    %37 = arith.mulf %36, %34 : vector<8x128xf32>
    %38 = arith.mulf %25, %5 : vector<8x128xf32>
    %39 = arith.addf %37, %38 : vector<8x128xf32>
    %40 = vector.broadcast %4 : vector<1x128xf32> to vector<8x128xf32>
    %41 = arith.mulf %39, %40 : vector<8x128xf32>
    %cst_17 = arith.constant dense<0.000000e+00> : vector<8xf32>
    %42 = vector.multi_reduction <add>, %41, %cst_17 [1] : vector<8x128xf32> to vector<8xf32>
    %43 = vector.shape_cast %42 : vector<8xf32> to vector<8x1xf32>
    %44 = arith.index_cast %c0_i32 : i32 to index
    %c0_18 = arith.constant 0 : index
    %c0_19 = arith.constant 0 : index
    %45 = vector.load %arg12[%44, %c0_18, %c0_19] : memref<1x8x1xf32, #tpu.memory_space<vmem>>, vector<1x8x1xf32>
    %46 = vector.shape_cast %45 : vector<1x8x1xf32> to vector<8x1xf32>
    %47 = vector.shape_cast %43 : vector<8x1xf32> to vector<1x8x1xf32>
    tpu.vector_store %arg12[%44, %c0_18, %c0_19], %47 {strides = array<i32>} : memref<1x8x1xf32, #tpu.memory_space<vmem>>, vector<1x8x1xf32>,
    %c1_i32 = arith.constant 1 : i32
    %c0_20 = arith.constant 0 : index
    %c0_21 = arith.constant 0 : index
    %48 = vector.load %arg13[%c0_20, %c0_21] : memref<8x128xf32, #tpu.memory_space<vmem>>, vector<8x128xf32>
    tpu.vector_store %arg13[%c0_20, %c0_21], %39 {strides = array<i32>} : memref<8x128xf32, #tpu.memory_space<vmem>>, vector<8x128xf32>,
    %c0_22 = arith.constant 0 : index
    %c0_23 = arith.constant 0 : index
    %c0_24 = arith.constant 0 : index
    %49 = vector.load %arg2[%c0_22, %c0_23, %c0_24] : memref<1x8x64xf32, #tpu.memory_space<vmem>>, vector<1x8x64xf32>
    %c0_25 = arith.constant 0 : index
    %c0_26 = arith.constant 0 : index
    %50 = vector.load %arg9[%c0_25, %c0_26] : memref<1x64xf32, #tpu.memory_space<vmem>>, vector<1x64xf32>
    %51 = vector.shape_cast %50 : vector<1x64xf32> to vector<1x1x64xf32>
    %52 = vector.broadcast %51 : vector<1x1x64xf32> to vector<1x8x64xf32>
    %53 = arith.mulf %49, %52 : vector<1x8x64xf32>
    %cst_27 = arith.constant dense<0.000000e+00> : vector<1x8xf32>
    %54 = vector.multi_reduction <add>, %53, %cst_27 [2] : vector<1x8x64xf32> to vector<1x8xf32>
    %55 = vector.shape_cast %54 : vector<1x8xf32> to vector<1x8x1xf32>
    %c0_28 = arith.constant 0 : index
    %c0_29 = arith.constant 0 : index
    %c0_30 = arith.constant 0 : index
    %56 = vector.load %arg12[%c0_28, %c0_29, %c0_30] : memref<1x8x1xf32, #tpu.memory_space<vmem>>, vector<1x8x1xf32>
    %57 = arith.addf %56, %55 : vector<1x8x1xf32>
    %c0_31 = arith.constant 0 : index
    %c0_32 = arith.constant 0 : index
    %58 = vector.load %arg11[%c0_31, %c0_32] : memref<1x1xf32, #tpu.memory_space<vmem>>, vector<1x1xf32>
    %59 = vector.shape_cast %58 : vector<1x1xf32> to vector<1x1x1xf32>
    %60 = vector.broadcast %59 : vector<1x1x1xf32> to vector<1x8x1xf32>
    %61 = arith.addf %57, %60 : vector<1x8x1xf32>
    %c0_33 = arith.constant 0 : index
    %c0_34 = arith.constant 0 : index
    %c0_35 = arith.constant 0 : index
    %62 = vector.load %arg12[%c0_33, %c0_34, %c0_35] : memref<1x8x1xf32, #tpu.memory_space<vmem>>, vector<1x8x1xf32>
    tpu.vector_store %arg12[%c0_33, %c0_34, %c0_35], %61 {strides = array<i32>} : memref<1x8x1xf32, #tpu.memory_space<vmem>>, vector<1x8x1xf32>,
    return
  }
  func.func @transform_0(%arg0: i32) -> (i32, i32, i32) {
    %c0_i32 = arith.constant 0 : i32
    %c0_i32_0 = arith.constant 0 : i32
    %c0_i32_1 = arith.constant 0 : i32
    %c0_i32_2 = arith.constant 0 : i32
    return %c0_i32, %c0_i32_0, %c0_i32_1 : i32, i32, i32
  }
  func.func @transform_1(%arg0: i32) -> (i32, i32, i32) {
    %c0_i32 = arith.constant 0 : i32
    %c0_i32_0 = arith.constant 0 : i32
    %c0_i32_1 = arith.constant 0 : i32
    %c0_i32_2 = arith.constant 0 : i32
    return %c0_i32, %c0_i32_0, %c0_i32_1 : i32, i32, i32
  }
  func.func @transform_2(%arg0: i32) -> (i32, i32) {
    %c0_i32 = arith.constant 0 : i32
    %c0_i32_0 = arith.constant 0 : i32
    %c0_i32_1 = arith.constant 0 : i32
    return %c0_i32, %c0_i32_0 : i32, i32
  }
  func.func @transform_3(%arg0: i32) -> (i32, i32) {
    %c0_i32 = arith.constant 0 : i32
    %c0_i32_0 = arith.constant 0 : i32
    %c0_i32_1 = arith.constant 0 : i32
    return %c0_i32, %c0_i32_0 : i32, i32
  }
  func.func @transform_4(%arg0: i32) -> (i32, i32) {
    %c0_i32 = arith.constant 0 : i32
    %c0_i32_0 = arith.constant 0 : i32
    %c0_i32_1 = arith.constant 0 : i32
    return %c0_i32, %c0_i32_0 : i32, i32
  }
  func.func @transform_5(%arg0: i32) -> (i32, i32) {
    %c0_i32 = arith.constant 0 : i32
    %c0_i32_0 = arith.constant 0 : i32
    %c0_i32_1 = arith.constant 0 : i32
    return %c0_i32, %c0_i32_0 : i32, i32
  }
  func.func @transform_6(%arg0: i32) -> (i32, i32) {
    %c0_i32 = arith.constant 0 : i32
    %c0_i32_0 = arith.constant 0 : i32
    %c0_i32_1 = arith.constant 0 : i32
    return %c0_i32, %c0_i32_0 : i32, i32
  }
  func.func @transform_7(%arg0: i32) -> (i32, i32) {
    %c0_i32 = arith.constant 0 : i32
    %c0_i32_0 = arith.constant 0 : i32
    %c0_i32_1 = arith.constant 0 : i32
    return %c0_i32, %c0_i32_0 : i32, i32
  }
  func.func @transform_8(%arg0: i32) -> (i32, i32) {
    %c0_i32 = arith.constant 0 : i32
    %c0_i32_0 = arith.constant 0 : i32
    %c0_i32_1 = arith.constant 0 : i32
    return %c0_i32, %c0_i32_0 : i32, i32
  }
  func.func @transform_9(%arg0: i32) -> (i32, i32) {
    %c0_i32 = arith.constant 0 : i32
    %c0_i32_0 = arith.constant 0 : i32
    %c0_i32_1 = arith.constant 0 : i32
    return %c0_i32, %c0_i32_0 : i32, i32
  }
  func.func @transform_10(%arg0: i32) -> (i32, i32) {
    %c0_i32 = arith.constant 0 : i32
    %c0_i32_0 = arith.constant 0 : i32
    %c0_i32_1 = arith.constant 0 : i32
    return %c0_i32, %c0_i32_0 : i32, i32
  }
  func.func @transform_11(%arg0: i32) -> (i32, i32, i32) {
    %c0_i32 = arith.constant 0 : i32
    %c0_i32_0 = arith.constant 0 : i32
    %c0_i32_1 = arith.constant 0 : i32
    %c0_i32_2 = arith.constant 0 : i32
    return %c0_i32, %c0_i32_0, %c0_i32_1 : i32, i32, i32
  }
  func.func @transform_12(%arg0: i32) -> (i32, i32) {
    %c0_i32 = arith.constant 0 : i32
    %c0_i32_0 = arith.constant 0 : i32
    %c0_i32_1 = arith.constant 0 : i32
    return %c0_i32, %c0_i32_0 : i32, i32
  }
}

</mosaic_0001>

<bundles_post_ra>
// kernel: tpu_custom_call.1
= control target key start
LH: loop header
LB: loop body
LE: loop exit
PB: predicated region body
PF: predicated region fallthrough
CT: control target
= control target key end

     0   :  { %s538_s0 = inlined_call_operand.vmem [shape: f32[1,8,1], index: 0, kind: input, shape index: {}]   ;;  %s539_s1 = inlined_call_operand.vmem [shape: f32[1,8,64], index: 1, kind: input, shape index: {}]   ;;  %s540_s2 = inlined_call_operand.hbm [shape: f32[8,128], index: 2, kind: input, shape index: {}]   ;;  %s541_s3 = inlined_call_operand.vmem [shape: f32[1,384], index: 3, kind: input, shape index: {}]   ;;  %s542_s4 = inlined_call_operand.hbm [shape: f32[128,384], index: 4, kind: input, shape index: {}]   ;;  %s543_s5 = inlined_call_operand.vmem [shape: f32[1,256], index: 5, kind: input, shape index: {}]   ;;  %s544_s6 = inlined_call_operand.vmem [shape: f32[1,128], index: 6, kind: input, shape index: {}]   ;;  %s545_s7 = inlined_call_operand.vmem [shape: f32[1,128], index: 7, kind: input, shape index: {}]   ;;  %s546_s8 = inlined_call_operand.vmem [shape: f32[1,64], index: 8, kind: input, shape index: {}]   ;;  %s547_s9 = inlined_call_operand.vmem [shape: f32[1,128], index: 9, kind: input, shape index: {}]   ;;  %s548_s10 = inlined_call_operand.<no memory space> [shape: f32[1,1], index: 10, kind: input, shape index: {}]   ;;  %s549_s11 = inlined_call_operand.vmem [shape: f32[1,8,1], index: 11, kind: output, shape index: {0}]   ;;  %s550_s12 = inlined_call_operand.hbm [shape: f32[8,128], index: 12, kind: output, shape index: {1}]  }
   0x1   :  { %v18_v0 = vstv %s548_s10 }
   0x2   :  { %19 = vst [vmem:[#allocation2] sm:$0x1] %v18_v0 }
   0x3   :  { %20 = vsyncpa [#allocation4], 0 }
   0x4   :  { %21 = vsyncpa [#allocation7], 0 }
   0x5   :  { %22 = vsyncpa [#allocation5], 0  ;;  %s32_s25 = sshll.u32 %s540_s2, 4  ;;  %s416_s26 = smov [#allocation3]   ;;  %s33_s25 = int_to_ptr.hbm [resolvable:$true] %s32_s25 }
   0x6   :  { %s34_s27 = sshll.u32 %s416_s26, 4  ;;  %s44_s30 = sshll.u32 %s542_s4, 4  ;;  %s35_s27 = int_to_ptr.vmem [resolvable:$true] %s34_s27  ;;  %s45_s30 = int_to_ptr.hbm [resolvable:$true] %s44_s30 }
   0x7   :  { %37 = dma.hbm_to_vmem [thread:$0]  %s33_s25, 128, %s35_s27, [#allocation4]  }
   0x8   :  { %s417_s13 = smov [#allocation6]   ;;  %s418_s14 = smov 384  }
   0x9   :  { %s46_s10 = sshll.u32 %s417_s13, 4  ;;  %s419_s15 = smov 24   ;;  %s47_s10 = int_to_ptr.vmem [resolvable:$true] %s46_s10 }
   0xa   :  { %52 = dma.hbm_to_vmem [thread:$0]  %s45_s30, 6144, %s47_s10, [#allocation7], %s418_s14, %s418_s14, %s419_s15  }
   0xb   :  { %410 = dma.done.wait [#allocation4], 128  }
   0xc   :  { %411 = vsyncadd [#allocation4], 4294967168 }
   0xd   :  { %412 = dma.done.wait [#allocation7], 6144  }
   0xe   :  { %413 = vsyncadd [#allocation7], 4294961152  ;;  %v140_v1 = vld [vmem:[#allocation6 + $0x168] sm:$0xff]  ;;  %v141_v2 = vld [vmem:[#allocation6 + $0x170] sm:$0xff]  ;;  %v420_v7 = vmov 0   ;;  %vm280_vm0 = vcmask 523264  }
   0xf   :  { %v137_v3 = vld [vmem:[#allocation6 + $0x150] sm:$0xff]  ;;  %143 = vmatpush.msra.mxu0 %v140_v1  ;;  %163 = vmatpush.msra.mxu1 %v141_v2  ;;  %v138_v4 = vld [vmem:[#allocation6 + $0x158] sm:$0xff]  ;;  %v135_v6 = vld [vmem:[#allocation6 + $0x140] sm:$0xff]  ;;  %s421_s23 = smov [#allocation8]   ;;  %s301_s27 = sshll.u32 %s550_s12, 4  ;;  %vm271_vm9 = vcmask 7168   ;;  %s302_s27 = int_to_ptr.hbm [resolvable:$true] %s301_s27 }
  0x10   :  { %v134_v5 = vld [vmem:[#allocation6 + $0x138] sm:$0xff]  ;;  %322 = vset.pattern.permute.xlu0 %v420_v7  ;;  %v131_v8 = vld [vmem:[#allocation6 + $0x120] sm:$0xff]  ;;  %v132_v9 = vld [vmem:[#allocation6 + $0x128] sm:$0xff]  ;;  %s299_s24 = sshll.u32 %s421_s23, 4  ;;  %s300_s24 = int_to_ptr.vmem [resolvable:$true] %s299_s24 }
  0x11   :  { %144 = vmatpush.msra.mxu0 %v137_v3  ;;  %164 = vmatpush.msra.mxu1 %v138_v4  ;;  %v128_v10 = vld [vmem:[#allocation6 + $0x108] sm:$0xff]  ;;  %v129_v11 = vld [vmem:[#allocation6 + $0x110] sm:$0xff]  ;;  %v126_v13 = vld [vmem:[#allocation6 + $0xf8] sm:$0xff] }
  0x12   :  { %v125_v12 = vld [vmem:[#allocation6 + $0xf0] sm:$0xff]  ;;  %v142_v14 = vld [vmem:[#allocation6 + $0x178] sm:$0xff]  ;;  %v139_v15 = vld [vmem:[#allocation6 + $0x160] sm:$0xff] }
  0x13   :  { %145 = vmatpush.msra.mxu0 %v134_v5  ;;  %165 = vmatpush.msra.mxu1 %v135_v6  ;;  %v122_v16 = vld [vmem:[#allocation6 + $0xd8] sm:$0xff]  ;;  %v123_v17 = vld [vmem:[#allocation6 + $0xe0] sm:$0xff]  ;;  %v136_v18 = vld [vmem:[#allocation6 + $0x148] sm:$0xff] }
  0x14   :  { %183 = vmatpush.msra.mxu2 %v142_v14  ;;  %v119_v19 = vld [vmem:[#allocation6 + $0xc0] sm:$0xff]  ;;  %v120_v20 = vld [vmem:[#allocation6 + $0xc8] sm:$0xff]  ;;  %v133_v21 = vld [vmem:[#allocation6 + $0x130] sm:$0xff] }
  0x15   :  { %146 = vmatpush.msra.mxu0 %v131_v8  ;;  %166 = vmatpush.msra.mxu1 %v132_v9  ;;  %v116_v22 = vld [vmem:[#allocation6 + $0xa8] sm:$0xff]  ;;  %v117_v23 = vld [vmem:[#allocation6 + $0xb0] sm:$0xff]  ;;  %v130_v26 = vld [vmem:[#allocation6 + $0x118] sm:$0xff] }
  0x16   :  { %184 = vmatpush.msra.mxu2 %v139_v15  ;;  %v79_v24 = vld [vmem:[%s538_s0] sm:$0xff]  ;;  %v127_v28 = vld [vmem:[#allocation6 + $0x100] sm:$0xff]  ;;  %v124_v31 = vld [vmem:[#allocation6 + $0xe8] sm:$0xff] }
  0x17   :  { %147 = vmatpush.msra.mxu0 %v128_v10  ;;  %167 = vmatpush.msra.mxu1 %v129_v11  ;;  %v113_v25 = vld [vmem:[#allocation6 + $0x90] sm:$0xff]  ;;  %v114_v27 = vld [vmem:[#allocation6 + $0x98] sm:$0xff]  ;;  %v111_v30 = vld [vmem:[#allocation6 + $0x80] sm:$0xff] }
  0x18   :  { %185 = vmatpush.msra.mxu2 %v136_v18  ;;  %82 = vperm.xlu0 %322, %v79_v24   ;;  %v110_v29 = vld [vmem:[#allocation6 + $0x78] sm:$0xff]  ;;  %v107_v32 = vld [vmem:[#allocation6 + $0x60] sm:$0xff]  ;;  %v108_v33 = vld [vmem:[#allocation6 + $0x68] sm:$0xff] }
  0x19   :  { %148 = vmatpush.msra.mxu0 %v125_v12  ;;  %168 = vmatpush.msra.mxu1 %v126_v13  ;;  %v121_v34 = vld [vmem:[#allocation6 + $0xd0] sm:$0xff]  ;;  %v104_v35 = vld [vmem:[#allocation6 + $0x48] sm:$0xff]  ;;  %v118_v37 = vld [vmem:[#allocation6 + $0xb8] sm:$0xff] }
  0x1a   :  { %186 = vmatpush.msra.mxu2 %v133_v21  ;;  %v105_v36 = vld [vmem:[#allocation6 + $0x50] sm:$0xff]  ;;  %v102_v39 = vld [vmem:[#allocation6 + $0x38] sm:$0xff]  ;;  %v115_v40 = vld [vmem:[#allocation6 + $0xa0] sm:$0xff] }
  0x1b   :  { %149 = vmatpush.msra.mxu0 %v122_v16  ;;  %169 = vmatpush.msra.mxu1 %v123_v17  ;;  %v101_v38 = vld [vmem:[#allocation6 + $0x30] sm:$0xff]  ;;  %v98_v41 = vld [vmem:[#allocation6 + $0x18] sm:$0xff]  ;;  %v99_v42 = vld [vmem:[#allocation6 + $0x20] sm:$0xff] }
  0x1c   :  { %187 = vmatpush.msra.mxu2 %v130_v26  ;;  %v112_v43 = vld [vmem:[#allocation6 + $0x88] sm:$0xff]  ;;  %v95_v44 = vld [vmem:[#allocation6] sm:$0xff]  ;;  %v499_v46 = vld [vmem:[#allocation3] sm:$0xff] }
  0x1d   :  { %150 = vmatpush.msra.mxu0 %v119_v19  ;;  %170 = vmatpush.msra.mxu1 %v120_v20  ;;  %v96_v45 = vld [vmem:[#allocation6 + $0x8] sm:$0xff]  ;;  %v109_v47 = vld [vmem:[#allocation6 + $0x70] sm:$0xff]  ;;  %v106_v48 = vld [vmem:[#allocation6 + $0x58] sm:$0xff] }
  0x1e   :  { %188 = vmatpush.msra.mxu2 %v127_v28  ;;  %v103_v49 = vld [vmem:[#allocation6 + $0x40] sm:$0xff]  ;;  %v100_v50 = vld [vmem:[#allocation6 + $0x28] sm:$0xff]  ;;  %v97_v51 = vld [vmem:[#allocation6 + $0x10] sm:$0xff] }
  0x1f   :  { %151 = vmatpush.msra.mxu0 %v116_v22  ;;  %171 = vmatpush.msra.mxu1 %v117_v23  ;;  %v73_v52 = vld [vmem:[%s541_s3] sm:$0x7] }
  0x20   :  { %189 = vmatpush.msra.mxu2 %v124_v31  ;;  %v86_v53 = vperm.slane %v73_v52, 0  ;;  %v87_v54 = vperm.slane %v73_v52, 1  ;;  %v74_v56 = vld [vmem:[%s543_s5] sm:$0x3]  ;;  %v88_v17 = vperm.slane %v73_v52, 2 }
  0x21   :  { %152 = vmatpush.msra.mxu0 %v113_v25  ;;  %172 = vmatpush.msra.mxu1 %v114_v27  ;;  %v206_v59 = vperm.slane %v74_v56, 0  ;;  %v207_v60 = vperm.slane %v74_v56, 1  ;;  %v274_v9 = vld [vmem:[%s539_s1] sm:$0xff] }
  0x22   :  { %190 = vmatpush.msra.mxu2 %v121_v34  ;;  %v326_v10 = vld [vmem:[%s546_s8] ss:$0 sm:$0xff] }
  0x23   :  { %153 = vmatpush.msra.mxu0 %v110_v29  ;;  %173 = vmatpush.msra.mxu1 %v111_v30  ;;  %v279_v11 = vmul.f32 %v326_v10, %v274_v9  ;;  %v324_v19 = vld [vmem:[%s545_s7] ss:$0 sm:$0xff] }
  0x24   :  { %191 = vmatpush.msra.mxu2 %v118_v37  ;;  %v323_v27 = vld [vmem:[%s544_s6] ss:$0 sm:$0xff] }
  0x25   :  { %154 = vmatpush.msra.mxu0 %v107_v32  ;;  %174 = vmatpush.msra.mxu1 %v108_v33  ;;  %v281_v13 = vsel %vm280_vm0, %v279_v11, 0.0 }
  0x26   :  { %192 = vmatpush.msra.mxu2 %v115_v40  ;;  %282 = vadd.xlane.f32.xlu1 %v281_v13 }
  0x27   :  { %155 = vmatpush.msra.mxu0 %v104_v35  ;;  %175 = vmatpush.msra.mxu1 %v105_v36 }
  0x28   :  { %193 = vmatpush.msra.mxu2 %v112_v43 }
  0x29   :  { %156 = vmatpush.msra.mxu0 %v101_v38  ;;  %176 = vmatpush.msra.mxu1 %v102_v39 }
  0x2a   :  { %194 = vmatpush.msra.mxu2 %v109_v47  ;;  %v325_v47 = vld [vmem:[%s547_s9] ss:$0 sm:$0xff] }
  0x2b   :  { %157 = vmatpush.msra.mxu0 %v98_v41  ;;  %177 = vmatpush.msra.mxu1 %v99_v42 }
  0x2c   :  { %195 = vmatpush.msra.mxu2 %v106_v48 }
  0x2d   :  { %158 = vmatpush.msra.mxu0 %v95_v44  ;;  %178 = vmatpush.msra.mxu1 %v96_v45 }
  0x2e   :  { %159 = vmatmul.f32.vlgmr.msra.gmra.mxu0 %v499_v46  ;;  %179 = vmatmul.f32.vlgmr.msra.gmra.mxu1 %v499_v46 }
  0x2f   :  { %196 = vmatpush.msra.mxu2 %v103_v49 }
  0x31   :  { %197 = vmatpush.msra.mxu2 %v100_v50 }
  0x33   :  { %198 = vmatpush.msra.mxu2 %v97_v51  ;;  %v327_v51 = vld [vmem:[#allocation2] ss:$0 sm:$0xff] }
  0x34   :  { %199 = vmatmul.f32.vlgmr.msra.gmra.mxu2 %v499_v46 }
  0x8a   :  { %v83_v55 = vpop.permute.xlu0 %82 }
  0x8b   :  { %v92_v57 = vmul.f32 %v86_v53, %v83_v55  ;;  %v93_v58 = vmul.f32 %v87_v54, %v83_v55  ;;  %v94_v26 = vmul.f32 %v88_v17, %v83_v55 }
  0x8d   :  { %v253_v34 = vadd.f32 %v323_v27, %v94_v26 }
  0xab   :  { %v160_v61 = vpop.f32.mrf.mxu0  ;;  %v180_v62 = vpop.f32.mrf.mxu1 }
  0xac   :  { %v203_v63 = vadd.f32 %v160_v61, %v92_v57  ;;  %v204_v0 = vadd.f32 %v180_v62, %v93_v58 }
  0xae   :  { %v210_v1 = vadd.f32 %v206_v59, %v203_v63  ;;  %v211_v2 = vadd.f32 %v207_v60, %v204_v0 }
  0xb0   :  { %v314_v3 = vmul.f32 -1.442695, %v210_v1  ;;  %v315_v4 = vmul.f32 -1.442695, %v211_v2 }
  0xb2   :  { %328 = vpow2.f32 %v314_v3 }
  0xb3   :  { %330 = vpow2.f32 %v315_v4 }
  0xb7   :  { %v200_v20 = vpop.f32.mrf.mxu2 }
  0xb8   :  { %v329_v5 = vpop.eup %328  ;;  %v257_v29 = vadd.f32 %v324_v19, %v200_v20 }
  0xb9   :  { %v331_v6 = vpop.eup %330  ;;  %v218_v7 = vadd.f32 1.0, %v329_v5 }
  0xba   :  { %v219_v8 = vadd.f32 1.0, %v331_v6 }
  0xbb   :  { %332 = vrcp.f32 %v218_v7  ;;  %v231_v21 = vand.u32 2147483648, %v218_v7  ;;  %v229_v24 = vand.u32 2147483647, %v218_v7  ;;  %vm225_vm2 = vweird.f32 %v218_v7 }
  0xbc   :  { %334 = vrcp.f32 %v219_v8  ;;  %v246_v36 = vand.u32 2147483648, %v219_v8  ;;  %vm240_vm6 = vweird.f32 %v219_v8  ;;  %v244_v37 = vand.u32 2147483647, %v219_v8 }
  0xbd   :  { %v232_v30 = vor.u32 1.1754944e-38, %v231_v21  ;;  %vm230_vm4 = vcmp.eq.f32.partialorder %v229_v24, 8.507059e+37 }
  0xbe   :  { %v247_v40 = vor.u32 1.1754944e-38, %v246_v36  ;;  %vm245_vm8 = vcmp.eq.f32.partialorder %v244_v37, 8.507059e+37 }
  0xc1   :  { %v333_v12 = vpop.eup %332 }
  0xc2   :  { %v335_v14 = vpop.eup %334  ;;  %v221_v15 = vmul.f32 %v333_v12, %v218_v7  ;;  %vm226_vm1 = vweird.f32 %v333_v12 }
  0xc3   :  { %v236_v16 = vmul.f32 %v335_v14, %v219_v8  ;;  %vm227_vm3 = vmor %vm225_vm2, %vm226_vm1  ;;  %vm241_vm5 = vweird.f32 %v335_v14 }
  0xc4   :  { %v222_v18 = vsub.f32 1.0, %v221_v15  ;;  %vm242_vm7 = vmor %vm240_vm6, %vm241_vm5 }
  0xc5   :  { %v237_v22 = vsub.f32 1.0, %v236_v16 }
  0xc6   :  { %v223_v23 = vmul.f32 %v333_v12, %v222_v18 }
  0xc7   :  { %v238_v25 = vmul.f32 %v335_v14, %v237_v22 }
  0xc8   :  { %v224_v28 = vadd.f32 %v333_v12, %v223_v23 }
  0xc9   :  { %v239_v33 = vadd.f32 %v335_v14, %v238_v25 }
  0xca   :  { %v228_v31 = vsel %vm227_vm3, %v333_v12, %v224_v28 }
  0xcb   :  { %v233_v32 = vsel %vm230_vm4, %v232_v30, %v228_v31  ;;  %v243_v39 = vsel %vm242_vm7, %v335_v14, %v239_v33 }
  0xcc   :  { %v258_v35 = vmul.f32 %v257_v29, %v233_v32  ;;  %v248_v41 = vsel %vm245_vm8, %v247_v40, %v243_v39 }
  0xcd   :  { %v261_v42 = vsub.f32 1.0, %v248_v41  ;;  %v263_v45 = vmul.f32 %v248_v41, %v499_v46  ;;  %v283_v46 = vpop.xlane.xlu1 %282 }
  0xce   :  { %v259_v38 = vadd.f32 %v258_v35, %v253_v34 }
  0xd0   :  { %336 = vtanh.f32 %v259_v38 }
  0xd6   :  { %v337_v43 = vpop.eup %336 }
  0xd7   :  { %v262_v44 = vmul.f32 %v337_v43, %v261_v42 }
  0xd9   :  { %v264_v48 = vadd.f32 %v263_v45, %v262_v44 }
  0xdb   :  { %v268_v49 = vmul.f32 %v325_v47, %v264_v48  ;;  %273 = vst [vmem:[#allocation8] sm:$0xff] %v264_v48 }
  0xdc   :  { %304 = dma.vmem_to_hbm [thread:$0]  %s300_s24, 128, %s302_s27, [#allocation5]  }
  0xdd   :  { %269 = vadd.xlane.f32.xlu0 %v268_v49 }
 0x150   :  { %v270_v50 = vpop.xlane.xlu0 %269 }
 0x151   :  { %272 = vst.msk [vmem:[%s549_s11] sm:$0xff] %vm271_vm9, %v270_v50 }
 0x158   :  { %v284_v52 = vld [vmem:[%s549_s11] sm:$0xff] }
 0x159   :  { %v285_v53 = vadd.f32 %v284_v52, %v283_v46 }
 0x15b   :  { %v290_v54 = vadd.f32 %v327_v51, %v285_v53 }
 0x15d   :  { %291 = vst.msk [vmem:[%s549_s11] sm:$0xff] %vm271_vm9, %v290_v54 }
 0x15e   :  { %414 = dma.done.wait [#allocation5], 128  }
 0x15f   :  { %415 = vsyncadd [#allocation5], 4294967168 }
 0x160   :  { %311 = vsyncpa [#allocation4], 1 }
 0x161   :  { %312 = vsyncpa [#allocation7], 1 }
 0x162   :  { %313 = vsyncpa [#allocation5], 1 }

</bundles_post_ra>
